<compile_context>
chip_gen: v6e
topology: v6e:2x2x1
jax: 0.10.0
libtpu: 0.0.40
codegen_flags: <defaults>
</compile_context>

<pallas_src>
import functools

import jax
import jax.numpy as jnp
from jax.experimental import pallas as pl
from jax.experimental.pallas import tpu as pltpu


def _focal_partials_kernel(preds_ref, labels_ref, out_ref, sum_acc, cnt_acc,
                           *, ignore_index, valid_len, tile_lanes, fold,
                           nl_per_chunk, need_tail_mask):
    """Accumulate per-(batch-row, spatial-chunk) (sum NLL, valid count).

    preds_ref : (1, C, TL)  input-dtype VMEM tile  (classes on sublanes)
    labels_ref: (1, 1, TL)  integer VMEM tile      (pixels on lanes)
    out_ref   : (1, 1, 2, 128) float32 partials; row 0 = sum NLL, row 1 = count
    sum_acc   : (1, TL // fold) f32 scratch — folded lane-wise NLL partial
    cnt_acc   : (1, TL // fold) f32 scratch — folded lane-wise valid count
    """
    l = pl.program_id(2)
    nl = pl.num_programs(2)

    @pl.when(l == 0)
    def _init():
        sum_acc[...] = jnp.zeros_like(sum_acc)
        cnt_acc[...] = jnp.zeros_like(cnt_acc)

    x = preds_ref[0].astype(jnp.float32)            # (C, TL), cast in-register
    lbl = labels_ref[0].astype(jnp.int32)           # (1, TL)

    # Numerically stable log-softmax pieces over the class (sublane) axis.
    m = jnp.max(x, axis=0, keepdims=True)           # (1, TL)
    z = x - m                                       # (C, TL)
    lse = jnp.log(jnp.sum(jnp.exp(z), axis=0, keepdims=True))   # (1, TL)

    # One-hot pick of the label logit (full log-prob tensor never built).
    class_ids = jax.lax.broadcasted_iota(jnp.int32, x.shape, 0)  # (C, TL)
    picked_z = jnp.sum(jnp.where(class_ids == lbl, z, 0.0),
                       axis=0, keepdims=True)       # (1, TL)
    picked_logp = picked_z - lse                    # (1, TL)

    valid = lbl != ignore_index                     # (1, TL) bool
    if need_tail_mask:
        # Only the globally last spatial block can be ragged. int32 position
        # math is fine for any realistic per-image pixel count (< 2^31).
        gl = pl.program_id(1) * nl_per_chunk + l    # global spatial block idx
        pos = gl * tile_lanes + jax.lax.broadcasted_iota(jnp.int32, lbl.shape, 1)
        valid = jnp.logical_and(valid, pos < valid_len)

    # Select (not multiply) so NaN/Inf garbage in OOB / ignored lanes is dropped.
    contrib_nll = jnp.where(valid, -picked_logp, 0.0)            # (1, TL)
    contrib_cnt = valid.astype(jnp.float32)                      # (1, TL)

    # Fold the contribution with lane-aligned slice adds (pure VPU) so the
    # 8-sublane-padded accumulators are fold-x smaller in VMEM.
    fl = tile_lanes // fold
    s = contrib_nll[:, 0:fl]
    c = contrib_cnt[:, 0:fl]
    for i in range(1, fold):
        lo = i * fl
        s = s + contrib_nll[:, lo:lo + fl]
        c = c + contrib_cnt[:, lo:lo + fl]
    sum_acc[...] = sum_acc[...] + s
    cnt_acc[...] = cnt_acc[...] + c

    @pl.when(l == nl - 1)
    def _finalize():
        total_s = jnp.sum(sum_acc[...])             # one cross-lane reduce
        total_c = jnp.sum(cnt_acc[...])             # per (batch row, chunk)
        rows = jax.lax.broadcasted_iota(jnp.int32, (2, 128), 0)
        vals = jnp.where(rows == 0, total_s, total_c)
        out_ref[...] = vals[None, None].astype(out_ref.dtype)


def _vmem_budget_and_limit():
    """Generation-aware (budget, limit) in bytes; conservative 64 MiB fallback."""
    capacity = 64 * 1024 * 1024
    try:
        info = pltpu.get_tpu_info()
        cap = getattr(info, "vmem_capacity_bytes", None)
        if cap:
            capacity = int(cap)
    except Exception:
        pass
    limit = (capacity * 3) // 4          # 96 MiB on 128 MiB parts, 48 MiB on v7x
    budget = (limit * 2) // 3            # 64 MiB / 32 MiB — always < limit
    return budget, limit


def _pick_tile(L, tl_max):
    """Largest multiple-of-128 lane tile <= tl_max; prefer a divisor of L."""
    lanes_cap = pl.cdiv(L, 128) * 128
    tl_max = max(128, min(int(tl_max), lanes_cap))
    tl_max = (tl_max // 128) * 128
    if L % 128 == 0:
        d = tl_max
        floor = max(128, tl_max // 2)     # don't shrink >2x just to skip the mask
        while d >= floor:
            if L % d == 0:
                return d, False
            d -= 128
    return tl_max, (L % tl_max) != 0


def focal_loss_pallas(preds, labels, *, alpha=0.5, gamma=2.0, ignore_index=255,
                      max_lanes=None):
    """preds: (N, C, H, W) float, labels: (N, H, W) int. Returns scalar f32."""
    N, C, H, W = preds.shape
    L = H * W

    # Free reshapes only — no transpose, no pad, no dtype change of preds.
    x = preds.reshape(N, C, L)
    y = labels.reshape(N, 1, L)
    # Keep narrow (<=4B) integer labels as-is (narrow HBM traffic, cast
    # in-register inside the kernel); only widen exotic dtypes.
    if not (jnp.issubdtype(y.dtype, jnp.integer) and y.dtype.itemsize <= 4):
        y = y.astype(jnp.int32)

    # ---- VMEM-budget-aware tile selection (dtype-aware sublane padding) ----
    vmem_budget, vmem_limit = _vmem_budget_and_limit()
    itemsize = x.dtype.itemsize
    sub_pack = max(8, 32 // itemsize)           # f32->8, bf16->16, int8/fp8->32
    c_sub = pl.cdiv(C, sub_pack) * sub_pack
    bytes_per_lane = (2 * c_sub * itemsize      # preds, double-buffered, padded
                      + 2 * 32                  # labels, double-buffered, padded
                      + 2 * 8 * 4 // 8)         # two f32 accumulators, 8-folded
    tl_budget = max(128, (vmem_budget // bytes_per_lane) // 128 * 128)
    tl_max = tl_budget if max_lanes is None else min(tl_budget, int(max_lanes))
    tl, need_tail_mask = _pick_tile(L, tl_max)

    fold = 1
    for f in (8, 4, 2):
        if tl % (f * 128) == 0:
            fold = f
            break

    nl_total = pl.cdiv(L, tl)
    # Spatial chunk axis: lets v7x's two TensorCores split the work even when
    # N == 1. Only chunk when the block count splits evenly (keeps indexing
    # exact); single-TC chips are unaffected.
    if nl_total >= 2 and nl_total % 2 == 0:
        n_chunks, nl_per_chunk = 2, nl_total // 2
    else:
        n_chunks, nl_per_chunk = 1, nl_total

    kernel = functools.partial(
        _focal_partials_kernel,
        ignore_index=int(ignore_index),
        valid_len=int(L),
        tile_lanes=int(tl),
        fold=int(fold),
        nl_per_chunk=int(nl_per_chunk),
        need_tail_mask=bool(need_tail_mask),
    )

    cost = pl.CostEstimate(
        flops=int(8 * N * C * L),
        transcendentals=int(N * L * (C + 1)),
        bytes_accessed=int(x.size * x.dtype.itemsize
                           + y.size * y.dtype.itemsize
                           + N * n_chunks * 2 * 128 * 4),
    )

    partials = pl.pallas_call(
        kernel,
        out_shape=jax.ShapeDtypeStruct((N, n_chunks, 2, 128), jnp.float32),
        grid_spec=pltpu.PrefetchScalarGridSpec(
            num_scalar_prefetch=0,
            grid=(N, n_chunks, nl_per_chunk),
            in_specs=[
                pl.BlockSpec((1, C, tl),
                             lambda n, c, l: (n, 0, c * nl_per_chunk + l)),
                pl.BlockSpec((1, 1, tl),
                             lambda n, c, l: (n, 0, c * nl_per_chunk + l)),
            ],
            out_specs=pl.BlockSpec((1, 1, 2, 128), lambda n, c, l: (n, c, 0, 0)),
            scratch_shapes=[
                pltpu.VMEM((1, tl // fold), jnp.float32),  # folded NLL partial
                pltpu.VMEM((1, tl // fold), jnp.float32),  # folded valid count
            ],
        ),
        compiler_params=pltpu.CompilerParams(
            dimension_semantics=("parallel", "parallel", "arbitrary"),
            vmem_limit_bytes=int(vmem_limit),
        ),
        cost_estimate=cost,
    )(x, y)

    # Tiny scalar finalization in JAX: mean CE over all valid pixels, then the
    # focal transform. (NaN if every label == ignore_index, matching PyTorch.)
    total_nll = jnp.sum(partials[:, :, 0, 0])
    total_cnt = jnp.sum(partials[:, :, 1, 0])
    ce = total_nll / total_cnt
    logpt = -ce
    pt = jnp.exp(logpt)
    if float(gamma) == 2.0:
        mod = (1.0 - pt) * (1.0 - pt)
    else:
        mod = (1.0 - pt) ** gamma
    return (-mod * alpha * logpt).astype(jnp.float32)


def focal_loss_ref(preds, labels, *, alpha=0.5, gamma=2.0, ignore_index=255):
    """Pure-JAX reference mirroring the PyTorch module."""
    N, C, H, W = preds.shape
    x = jnp.transpose(preds, (0, 2, 3, 1)).reshape(-1, C).astype(jnp.float32)
    y = labels.reshape(-1).astype(jnp.int32)
    logp = jax.nn.log_softmax(x, axis=-1)
    picked = jnp.take_along_axis(
        logp, jnp.clip(y, 0, C - 1)[:, None], axis=-1)[:, 0]
    valid = y != ignore_index
    ce = jnp.sum(jnp.where(valid, -picked, 0.0)) / jnp.sum(
        valid.astype(jnp.float32))
    logpt = -ce
    pt = jnp.exp(logpt)
    return -((1.0 - pt) ** gamma) * alpha * logpt


def _make_case(key, N, C, H, W, dtype):
    kp, kl, km = jax.random.split(key, 3)
    preds = jax.random.normal(kp, (N, C, H, W), dtype=jnp.float32).astype(dtype)
    labels = jax.random.randint(kl, (N, H, W), 0, C, dtype=jnp.int32)
    ignore = jax.random.uniform(km, (N, H, W)) < 0.1
    labels = jnp.where(ignore, 255, labels)
    return preds, labels


if __name__ == "__main__":
    # Module has no learnable parameters (weight=None); only alpha/gamma consts.
    key = jax.random.PRNGKey(0)
    k1, k2, k3 = jax.random.split(key, 3)

    # Case 1: default path (single spatial block, no tail mask), f32.
    p1, l1 = _make_case(k1, N=2, C=4, H=16, W=16, dtype=jnp.float32)
    out1 = jax.block_until_ready(focal_loss_pallas(p1, l1))
    ref1 = focal_loss_ref(p1, l1)
    assert jnp.allclose(out1, ref1, rtol=1e-5, atol=1e-5), (out1, ref1)

    # Case 2: multi-block + 2-way spatial chunking (both TCs on v7x), N=1, f32.
    p2, l2 = _make_case(k2, N=1, C=4, H=64, W=64, dtype=jnp.float32)
    out2 = jax.block_until_ready(focal_loss_pallas(p2, l2, max_lanes=512))
    ref2 = focal_loss_ref(p2, l2)
    assert jnp.allclose(out2, ref2, rtol=1e-5, atol=1e-5), (out2, ref2)

    # Case 3: bf16 preds, odd class count, ragged spatial tail (mask path).
    p3, l3 = _make_case(k3, N=1, C=5, H=24, W=24, dtype=jnp.bfloat16)
    out3 = jax.block_until_ready(focal_loss_pallas(p3, l3, max_lanes=256))
    ref3 = focal_loss_ref(p3, l3)
    assert jnp.allclose(out3, ref3, rtol=1e-4, atol=1e-4), (out3, ref3)

    print("KERNEL_OK")
</pallas_src>

<mosaic_0001>
module attributes {stable_mosaic.version = 11 : i64} {
  func.func @_focal_partials_kernel(%arg0: i32, %arg1: i32, %arg2: i32, %arg3: memref<1x4x256xf32, #tpu.memory_space<vmem>>, %arg4: memref<1x1x256xi32, #tpu.memory_space<vmem>>, %arg5: memref<1x1x2x128xf32, #tpu.memory_space<vmem>>, %arg6: memref<1x128xf32, #tpu.memory_space<vmem>>, %arg7: memref<1x128xf32, #tpu.memory_space<vmem>>) attributes {dimension_semantics = [#tpu.dimension_semantics<parallel>, #tpu.dimension_semantics<parallel>, #tpu.dimension_semantics<arbitrary>], iteration_bounds = array<i64: 2, 1, 1>, scalar_prefetch = 0 : i64, scratch_operands = 2 : i64, tpu.core_type = #tpu.core_type<tc>, window_params = [{transform_indices = @transform_0, window_bounds = array<i64: 1, 4, 256>}, {transform_indices = @transform_1, window_bounds = array<i64: 1, 1, 256>}, {transform_indices = @transform_2, window_bounds = array<i64: 1, 1, 2, 128>}]} {
    %c0_i32 = arith.constant 0 : i32
    %0 = arith.cmpi eq, %arg2, %c0_i32 : i32
    %1 = arith.extui %0 : i1 to i32
    %c0_i32_0 = arith.constant 0 : i32
    %2 = arith.cmpi ne, %1, %c0_i32_0 : i32
    scf.if %2 {
      %cst_21 = arith.constant 0.000000e+00 : f32
      %46 = vector.broadcast %cst_21 : f32 to vector<1x128xf32>
      %c0_22 = arith.constant 0 : index
      %c0_23 = arith.constant 0 : index
      %47 = vector.load %arg6[%c0_22, %c0_23] : memref<1x128xf32, #tpu.memory_space<vmem>>, vector<1x128xf32>
      tpu.vector_store %arg6[%c0_22, %c0_23], %46 {strides = array<i32>} : memref<1x128xf32, #tpu.memory_space<vmem>>, vector<1x128xf32>,
      %cst_24 = arith.constant 0.000000e+00 : f32
      %48 = vector.broadcast %cst_24 : f32 to vector<1x128xf32>
      %c0_25 = arith.constant 0 : index
      %c0_26 = arith.constant 0 : index
      %49 = vector.load %arg7[%c0_25, %c0_26] : memref<1x128xf32, #tpu.memory_space<vmem>>, vector<1x128xf32>
      tpu.vector_store %arg7[%c0_25, %c0_26], %48 {strides = array<i32>} : memref<1x128xf32, #tpu.memory_space<vmem>>, vector<1x128xf32>,
    } else {
    }
    %c0 = arith.constant 0 : index
    %c0_1 = arith.constant 0 : index
    %c0_2 = arith.constant 0 : index
    %3 = vector.load %arg3[%c0, %c0_1, %c0_2] : memref<1x4x256xf32, #tpu.memory_space<vmem>>, vector<1x4x256xf32>
    %4 = vector.shape_cast %3 : vector<1x4x256xf32> to vector<4x256xf32>
    %c0_3 = arith.constant 0 : index
    %c0_4 = arith.constant 0 : index
    %c0_5 = arith.constant 0 : index
    %5 = vector.load %arg4[%c0_3, %c0_4, %c0_5] : memref<1x1x256xi32, #tpu.memory_space<vmem>>, vector<1x1x256xi32>
    %6 = vector.shape_cast %5 : vector<1x1x256xi32> to vector<1x256xi32>
    %cst = arith.constant dense<0xFF800000> : vector<256xf32>
    %7 = vector.multi_reduction <maximumf>, %4, %cst [0] : vector<4x256xf32> to vector<256xf32>
    %8 = vector.shape_cast %7 : vector<256xf32> to vector<1x256xf32>
    %9 = vector.broadcast %8 : vector<1x256xf32> to vector<4x256xf32>
    %10 = arith.subf %4, %9 : vector<4x256xf32>
    %11 = math.exp %10 : vector<4x256xf32>
    %cst_6 = arith.constant dense<0.000000e+00> : vector<256xf32>
    %12 = vector.multi_reduction <add>, %11, %cst_6 [0] : vector<4x256xf32> to vector<256xf32>
    %13 = vector.shape_cast %12 : vector<256xf32> to vector<1x256xf32>
    %14 = math.log %13 : vector<1x256xf32>
    %15 = tpu.iota {dimensions = array<i32: 0>} : vector<4x256xi32>
    %16 = vector.broadcast %6 : vector<1x256xi32> to vector<4x256xi32>
    %17 = arith.cmpi eq, %15, %16 : vector<4x256xi32>
    %cst_7 = arith.constant 0.000000e+00 : f32
    %18 = vector.broadcast %cst_7 : f32 to vector<4x256xf32>
    %19 = arith.select %17, %10, %18 : vector<4x256xi1>, vector<4x256xf32>
    %cst_8 = arith.constant dense<0.000000e+00> : vector<256xf32>
    %20 = vector.multi_reduction <add>, %19, %cst_8 [0] : vector<4x256xf32> to vector<256xf32>
    %21 = vector.shape_cast %20 : vector<256xf32> to vector<1x256xf32>
    %22 = arith.subf %21, %14 : vector<1x256xf32>
    %c255_i32 = arith.constant 255 : i32
    %23 = vector.broadcast %c255_i32 : i32 to vector<1x256xi32>
    %24 = arith.cmpi ne, %6, %23 : vector<1x256xi32>
    %cst_9 = arith.constant 0.000000e+00 : f32
    %25 = vector.broadcast %cst_9 : f32 to vector<1x256xf32>
    %26 = arith.subf %25, %22 : vector<1x256xf32>
    %cst_10 = arith.constant 0.000000e+00 : f32
    %27 = vector.broadcast %cst_10 : f32 to vector<1x256xf32>
    %28 = arith.select %24, %26, %27 : vector<1x256xi1>, vector<1x256xf32>
    %29 = arith.extui %24 : vector<1x256xi1> to vector<1x256xi32>
    %30 = arith.sitofp %29 : vector<1x256xi32> to vector<1x256xf32>
    %31 = vector.extract_strided_slice %28 {offsets = [0, 0], sizes = [1, 128], strides = [1, 1]} : vector<1x256xf32> to vector<1x128xf32>
    %32 = vector.extract_strided_slice %30 {offsets = [0, 0], sizes = [1, 128], strides = [1, 1]} : vector<1x256xf32> to vector<1x128xf32>
    %33 = vector.extract_strided_slice %28 {offsets = [0, 128], sizes = [1, 128], strides = [1, 1]} : vector<1x256xf32> to vector<1x128xf32>
    %34 = arith.addf %31, %33 : vector<1x128xf32>
    %35 = vector.extract_strided_slice %30 {offsets = [0, 128], sizes = [1, 128], strides = [1, 1]} : vector<1x256xf32> to vector<1x128xf32>
    %36 = arith.addf %32, %35 : vector<1x128xf32>
    %c0_11 = arith.constant 0 : index
    %c0_12 = arith.constant 0 : index
    %37 = vector.load %arg6[%c0_11, %c0_12] : memref<1x128xf32, #tpu.memory_space<vmem>>, vector<1x128xf32>
    %38 = arith.addf %37, %34 : vector<1x128xf32>
    %c0_13 = arith.constant 0 : index
    %c0_14 = arith.constant 0 : index
    %39 = vector.load %arg6[%c0_13, %c0_14] : memref<1x128xf32, #tpu.memory_space<vmem>>, vector<1x128xf32>
    tpu.vector_store %arg6[%c0_13, %c0_14], %38 {strides = array<i32>} : memref<1x128xf32, #tpu.memory_space<vmem>>, vector<1x128xf32>,
    %c0_15 = arith.constant 0 : index
    %c0_16 = arith.constant 0 : index
    %40 = vector.load %arg7[%c0_15, %c0_16] : memref<1x128xf32, #tpu.memory_space<vmem>>, vector<1x128xf32>
    %41 = arith.addf %40, %36 : vector<1x128xf32>
    %c0_17 = arith.constant 0 : index
    %c0_18 = arith.constant 0 : index
    %42 = vector.load %arg7[%c0_17, %c0_18] : memref<1x128xf32, #tpu.memory_space<vmem>>, vector<1x128xf32>
    tpu.vector_store %arg7[%c0_17, %c0_18], %41 {strides = array<i32>} : memref<1x128xf32, #tpu.memory_space<vmem>>, vector<1x128xf32>,
    %c0_i32_19 = arith.constant 0 : i32
    %43 = arith.cmpi eq, %arg2, %c0_i32_19 : i32
    %44 = arith.extui %43 : i1 to i32
    %c0_i32_20 = arith.constant 0 : i32
    %45 = arith.cmpi ne, %44, %c0_i32_20 : i32
    scf.if %45 {
      %c0_21 = arith.constant 0 : index
      %c0_22 = arith.constant 0 : index
      %46 = vector.load %arg6[%c0_21, %c0_22] : memref<1x128xf32, #tpu.memory_space<vmem>>, vector<1x128xf32>
      %47 = vector.shape_cast %46 : vector<1x128xf32> to vector<1x1x128xf32>
      %cst_23 = arith.constant dense<0.000000e+00> : vector<1xf32>
      %48 = vector.multi_reduction <add>, %47, %cst_23 [1, 2] : vector<1x1x128xf32> to vector<1xf32>
      %49 = vector.shape_cast %48 : vector<1xf32> to vector<1x1x1xf32>
      %50 = vector.extract %49[0, 0, 0] : f32 from vector<1x1x1xf32>
      %c0_24 = arith.constant 0 : index
      %c0_25 = arith.constant 0 : index
      %51 = vector.load %arg7[%c0_24, %c0_25] : memref<1x128xf32, #tpu.memory_space<vmem>>, vector<1x128xf32>
      %52 = vector.shape_cast %51 : vector<1x128xf32> to vector<1x1x128xf32>
      %cst_26 = arith.constant dense<0.000000e+00> : vector<1xf32>
      %53 = vector.multi_reduction <add>, %52, %cst_26 [1, 2] : vector<1x1x128xf32> to vector<1xf32>
      %54 = vector.shape_cast %53 : vector<1xf32> to vector<1x1x1xf32>
      %55 = vector.extract %54[0, 0, 0] : f32 from vector<1x1x1xf32>
      %56 = tpu.iota {dimensions = array<i32: 0>} : vector<2x128xi32>
      %c0_i32_27 = arith.constant 0 : i32
      %57 = vector.broadcast %c0_i32_27 : i32 to vector<2x128xi32>
      %58 = arith.cmpi eq, %56, %57 : vector<2x128xi32>
      %59 = vector.broadcast %50 : f32 to vector<2x128xf32>
      %60 = vector.broadcast %55 : f32 to vector<2x128xf32>
      %61 = arith.select %58, %59, %60 : vector<2x128xi1>, vector<2x128xf32>
      %62 = vector.shape_cast %61 : vector<2x128xf32> to vector<1x1x2x128xf32>
      %c0_28 = arith.constant 0 : index
      %c0_29 = arith.constant 0 : index
      %c0_30 = arith.constant 0 : index
      %c0_31 = arith.constant 0 : index
      %63 = vector.load %arg5[%c0_28, %c0_29, %c0_30, %c0_31] : memref<1x1x2x128xf32, #tpu.memory_space<vmem>>, vector<1x1x2x128xf32>
      tpu.vector_store %arg5[%c0_28, %c0_29, %c0_30, %c0_31], %62 {strides = array<i32>} : memref<1x1x2x128xf32, #tpu.memory_space<vmem>>, vector<1x1x2x128xf32>,
    } else {
    }
    return
  }
  func.func @transform_0(%arg0: i32, %arg1: i32, %arg2: i32) -> (i32, i32, i32) {
    %c1_i32 = arith.constant 1 : i32
    %0 = arith.muli %arg1, %c1_i32 : i32
    %1 = arith.addi %0, %arg2 : i32
    %c0_i32 = arith.constant 0 : i32
    %c0_i32_0 = arith.constant 0 : i32
    return %arg0, %c0_i32, %1 : i32, i32, i32
  }
  func.func @transform_1(%arg0: i32, %arg1: i32, %arg2: i32) -> (i32, i32, i32) {
    %c1_i32 = arith.constant 1 : i32
    %0 = arith.muli %arg1, %c1_i32 : i32
    %1 = arith.addi %0, %arg2 : i32
    %c0_i32 = arith.constant 0 : i32
    %c0_i32_0 = arith.constant 0 : i32
    return %arg0, %c0_i32, %1 : i32, i32, i32
  }
  func.func @transform_2(%arg0: i32, %arg1: i32, %arg2: i32) -> (i32, i32, i32, i32) {
    %c0_i32 = arith.constant 0 : i32
    %c0_i32_0 = arith.constant 0 : i32
    %c0_i32_1 = arith.constant 0 : i32
    return %arg0, %arg1, %c0_i32, %c0_i32_0 : i32, i32, i32, i32
  }
}

</mosaic_0001>

<bundles_post_ra>
// kernel: tpu_custom_call.1
= control target key start
LH: loop header
LB: loop body
LE: loop exit
PB: predicated region body
PF: predicated region fallthrough
CT: control target
= control target key end

     0   :  { %7 = vsyncpa [#allocation5], 0  ;;  %s981_s0 = inlined_call_operand.hbm [shape: f32[2,4,256], index: 0, kind: input, shape index: {}]   ;;  %s982_s1 = inlined_call_operand.hbm [shape: s32[2,1,256], index: 1, kind: input, shape index: {}]   ;;  %s983_s2 = inlined_call_operand.hbm [shape: f32[2,1,2,128], index: 2, kind: output, shape index: {}]  }
   0x1   :  { %9 = vsyncpa [#allocation5 + $0x1], 0 }
   0x2   :  { %10 = vsyncpa [#allocation8], 0 }
   0x3   :  { %12 = vsyncpa [#allocation8 + $0x1], 0 }
   0x4   :  { %13 = vsyncpa [#allocation6], 0 }
   0x5   :  { %15 = vsyncpa [#allocation6 + $0x1], 0  ;;  %s784_s9 = smov 0   ;;  %s786_s10 = smov 0  }
   0x6   :  { %s788_s11 = smov 0   ;;  %s790_s12 = smov 0  }
   0x7   :  { %s792_s13 = smov 0   ;;  %s794_s14 = smov 0  }
   0x8 LB: > { %s521_s15 = sadd.s32 4294967295, %s762_s14   ;;  %s522_s16 = sadd.s32 4294967294, %s762_s14   ;;  %s762_s14 = sphi %s794_s14, %s21_s14   ;;  %s758_s13 = sphi %s792_s13, %s995_s13   ;;  %s754_s12 = sphi %s790_s12, %s994_s12   ;;  %s750_s11 = sphi %s788_s11, %s993_s11   ;;  %s746_s10 = sphi %s786_s10, %s992_s10   ;;  %s742_s9 = sphi %s784_s9, %s991_s9  }
   0x9   : > { %s40_s17 = sadd.s32 1, %s758_s13  ;;  %s51_s18 = sadd.s32 1, %s750_s11 }
   0xa   : > { %p42_p0 = scmp.ge.s32.totalorder %s40_s17, 2  ;;  %p58_p1 = scmp.ne.s32.totalorder %s750_s11, %s746_s10 }
   0xb   : > { %p59_p2 = scmp.eq.s32.totalorder %s762_s14, 0  ;;  %p64_p3 = scmp.ne.s32.totalorder %s746_s10, %s742_s9 }
   0xc   : > { %s997_s17 = smov (%p42_p0, %s40_s17), 0  ;;  %p65_p5 = scmp.eq.s32.totalorder %s521_s15, 0 }
   0xd   : > { %p825_p4 = por %p59_p2, %p58_p1  ;;  %s46_s20 = ssub.s32 %s758_s13, %s997_s17 }
   0xe   : > { %p120_p6 = scmp.eq.s32.totalorder %s521_s15, 1  ;;  %p49_p7 = scmp.eq.s32.totalorder %s46_s20, 0 }
   0xf   : > { %p831_p8 = por %p65_p5, %p64_p3  ;;  %p126_p10 = scmp.eq.s32.totalorder %s522_s16, 1 }
  0x10   : > { %p835_p9 = por %p120_p6, %p58_p1  ;;  %p563_p13 = scmp.lt.s32.totalorder %s762_s14, 2 }
  0x11   : > { %s840_s23 = scalar_select %p49_p7, %s750_s11, %s51_s18  }
  0x12   : > { %p842_p11 = por %p126_p10, %p64_p3  ;;  %s849_s25 = sand.u32 1, %s750_s11  }
  0x13   : > { %s525_s26 = sshll.u32 %s849_s25, 3  ;;  %s540_s27 = sshll.u32 %s758_s13, 7 }
  0x14   : > { %s159_s30 = scalar_lea.hbm %s981_s0, %s540_s27  ;;  %s150_s3 = scalar_lea.vmem [#allocation4], %s525_s26 }
  0x15   : > { %s161_s4 = sshll.u32 %s150_s3, 4  ;;  %p858_p0 = pnand %p563_p13, %p825_p4  ;;  %s162_s4 = int_to_ptr.vmem [resolvable:$true] %s161_s4 }
  0x16   : > { %p531_p1 = scmp.ge.s32.totalorder %s762_s14, 1  ;;  %p188_p2 = scmp.lt.s32.totalorder %s762_s14, 3 }
  0x17   : > { %s147_s6 = scalar_lea.sflag [#allocation5], %s849_s25  ;;  %p624_p3 = pneg %p858_p0 }
  0x18   : > { %s635_s7 = scalar_lea.vmem %s162_s4, 128  ;;  %s764_s8 = smov [#allocation4]  }
  0x19   : > { %p636_p5 = scmp.ne.s32.totalorder %s162_s4, %s635_s7  ;;  %s640_s15 = sshll.u32 %s764_s8, 4  ;;  %s641_s15 = int_to_ptr.vmem [resolvable:$false] %s640_s15 }
  0x1a   : > { %s642_s16 = scalar_lea.vmem %s641_s15, 256  ;;  %p643_p4 = scmp.lt.s32.totalorder %s162_s4, %s641_s15 }
  0x1b   : > { %p638_p6 = pnand %p636_p5, %p624_p3  ;;  %p644_p10 = scmp.lt.s32.totalorder %s642_s16, %s635_s7 }
  0x1d   : > { %p639_p7 = pneg %p638_p6  ;;  %p645_p13 = por %p644_p10, %p643_p4 }
  0x1f   : > { %p646_p12 = pnand %p645_p13, %p639_p7 }
  0x21   : > { %649 = shalt.err (!%p646_p12)
}
  0x22   : > { %555 = dma.hbm_to_vmem [thread:$0]  (!%p858_p0), %s159_s30, 128, %s162_s4, %s147_s6  }
  0x23   : > { %p876_p5 = pnand %p531_p1, %p188_p2  ;;  %s528_s19 = sshll.u32 %s849_s25, 1 }
  0x24   : > { %s541_s20 = sshll.u32 %s758_s13, 5  ;;  %s172_s29 = scalar_lea.vmem [#allocation7], %s528_s19 }
  0x25   : > { %s181_s28 = scalar_lea.hbm %s982_s1, %s541_s20  ;;  %s183_s3 = sshll.u32 %s172_s29, 4  ;;  %s184_s3 = int_to_ptr.vmem [resolvable:$true] %s183_s3 }
  0x26   : > { %s169_s7 = scalar_lea.sflag [#allocation8], %s849_s25  ;;  %s663_s8 = scalar_lea.vmem %s184_s3, 32 }
  0x27   : > { %p664_p12 = scmp.ne.s32.totalorder %s184_s3, %s663_s8  ;;  %s765_s30 = smov [#allocation7]  }
  0x28   : > { %s668_s4 = sshll.u32 %s765_s30, 4  ;;  %s669_s4 = int_to_ptr.vmem [resolvable:$false] %s668_s4 }
  0x29   : > { %p666_p6 = pnand %p664_p12, %p624_p3  ;;  %s670_s6 = scalar_lea.vmem %s669_s4, 64 }
  0x2a   : > { %p671_p1 = scmp.lt.s32.totalorder %s184_s3, %s669_s4  ;;  %p672_p2 = scmp.lt.s32.totalorder %s670_s6, %s663_s8 }
  0x2b   : > { %p667_p7 = pneg %p666_p6 }
  0x2c   : > { %p673_p4 = por %p672_p2, %p671_p1 }
  0x2e   : > { %p674_p10 = pnand %p673_p4, %p667_p7 }
  0x30   : > { %677 = shalt.err (!%p674_p10)
}
  0x31   : > { %558 = dma.hbm_to_vmem [thread:$0]  (!%p858_p0), %s181_s28, 32, %s184_s3, %s169_s7  }
  0x32   : > { %192 = sbr.rel (%p876_p5) target bundleno = 371 (0x173), region = 28  ;;  %s894_s25 = sand.u32 (!%p876_p5), 1, %s746_s10  }
  0x33   : > { %s532_s15 = sshll.u32 (!%p876_p5), %s894_s25, 3  ;;  %s195_s16 = scalar_lea.sflag (!%p876_p5), [#allocation5], %s894_s25 }
  0x34   : > { %s198_s19 = scalar_lea.vmem (!%p876_p5), [#allocation4], %s532_s15 }
  0x37   : > { %729 = dma.done.wait (%p831_p8), %s195_s16, 128  }
  0x38   : > { %731 = vsyncadd (%p831_p8), %s195_s16, 4294967168  ;;  %s533_s5 = sshll.u32 %s894_s25, 1  ;;  %s204_s18 = scalar_lea.sflag [#allocation8], %s894_s25 }
  0x39   : > { %s207_s20 = scalar_lea.vmem [#allocation7], %s533_s5 }
  0x3a   : > { %733 = dma.done.wait (%p831_p8), %s204_s18, 32  }
  0x3b   : > { %735 = vsyncadd (%p831_p8), %s204_s18, 4294967264  ;;  %v766_v0 = vmov 0.0   ;;  %vm248_vm0 = vcmask 1043456   ;;  %v243_v1 = vld [vmem:[%s198_s19] sm:$0xff]  ;;  %v910_v2 = vld [vmem:[%s207_s20] sm:$0x3]  ;;  %v291_v24 = vlaneseq }
  0x3c   : > { %241 = vst [vmem:[#allocation2] sm:$0x1] %v766_v0  ;;  %242 = vst [vmem:[#allocation3] sm:$0x1] %v766_v0  ;;  %v246_v3 = vcombine.high %v243_v1, %v243_v1  ;;  %v249_v4 = vsel %vm248_vm0, %v243_v1, -inf  ;;  %vm324_vm1 = vcmp.ne.s32.totalorder %v910_v2, 255 }
  0x3d   : > { %v250_v5 = vrot.slane %v249_v4, 4  ;;  %v535_v7 = vsel %vm324_vm1, 1.0, %v766_v0  ;;  %v917_v27 = vshrl.u32 %v291_v24, 7  ;;  %v767_v0 = vmov 1966171168   ;;  %s537_s21 = sshll.u32 %s754_s12, 5 }
  0x3e   : > { %v256_v6 = vsel %vm248_vm0, %v246_v3, -inf  ;;  %v353_v10 = vrot.slane %v535_v7, 1  ;;  %vm366_vm4 = vcmask 1040384   ;;  %s232_s27 = scalar_lea.vmem [#allocation9], %s533_s5  ;;  %s939_s8 = scalar_lea.hbm %s983_s2, %s537_s21 }
  0x3f   : > { %v251_v8 = vmax.f32 %v249_v4, %v250_v5  ;;  %v257_v9 = vrot.slane %v256_v6, 4  ;;  %v295_v28 = vsub.s32 0, %v917_v27  ;;  %v299_v29 = vsub.s32 1, %v917_v27  ;;  %s408_s28 = sshll.u32 %s232_s27, 4  ;;  %s394_s30 = scalar_lea.sflag [#allocation6], %s894_s25  ;;  %s409_s28 = int_to_ptr.vmem [resolvable:$true] %s408_s28 }
  0x40   : > { %v355_v14 = vadd.f32 %v535_v7, %v353_v10  ;;  %vm388_vm5 = vcmp.eq.s32.totalorder %v917_v27, 0  ;;  %s678_s4 = scalar_lea.vmem %s409_s28, 32  ;;  %s768_s12 = smov [#allocation9]  }
  0x41   : > { %v252_v12 = vrot.slane %v251_v8, 2  ;;  %v258_v13 = vmax.f32 %v256_v6, %v257_v9  ;;  %v296_v30 = vrot.slane %v910_v2, %v295_v28  ;;  %v300_v31 = vrot.slane %v910_v2, %v299_v29  ;;  %p679_p8 = scmp.ne.s32.totalorder %s409_s28, %s678_s4  ;;  %s682_s6 = sshll.u32 %s768_s12, 4  ;;  %s683_s6 = int_to_ptr.vmem [resolvable:$false] %s682_s6 }
  0x42   : > { %s684_s15 = scalar_lea.vmem %s683_s6, 64  ;;  %p685_p13 = scmp.lt.s32.totalorder %s409_s28, %s683_s6 }
  0x43   : > { %v359_v11 = vld [vmem:[#allocation3] sm:$0x1]  ;;  %v253_v15 = vmax.f32 %v251_v8, %v252_v12  ;;  %v259_v16 = vrot.slane %v258_v13, 2  ;;  %vm301_vm2 = vcmp.eq.s32.totalorder %v917_v27, %v296_v30  ;;  %vm302_vm3 = vcmp.eq.s32.totalorder %v917_v27, %v300_v31  ;;  %p680_p0 = pnand %p679_p8, %p835_p9  ;;  %p686_p5 = scmp.lt.s32.totalorder %s684_s15, %s678_s4 }
  0x44   : > { %v360_v17 = vadd.f32 %v359_v11, %v355_v14 }
  0x45   : > { %v254_v18 = vrot.slane %v253_v15, 1  ;;  %v260_v19 = vmax.f32 %v258_v13, %v259_v16  ;;  %p681_p3 = pneg %p680_p0  ;;  %p687_p12 = por %p686_p5, %p685_p13 }
  0x46   : > { %361 = vst [vmem:[#allocation3] sm:$0x1] %v360_v17 }
  0x47   : > { %v255_v20 = vmax.f32 %v253_v15, %v254_v18  ;;  %v261_v21 = vrot.slane %v260_v19, 1  ;;  %p688_p6 = pnand %p687_p12, %p681_p3 }
  0x49   : > { %v262_v22 = vmax.f32 %v260_v19, %v261_v21  ;;  %v356_v19 = vld [vmem:[#allocation2] sm:$0x1] }
  0x4b   : > { %v265_v23 = vcombine.low %v255_v20, %v262_v22 }
  0x4d   : > { %v267_v25 = vsub.f32 %v243_v1, %v265_v23  ;;  %v331_v1 = vunpack.c.l.s4 %v767_v0  ;;  %v377_v23 = vld [vmem:[#allocation3] sm:$0x1] }
  0x4f   : > { %v268_v26 = vmul.f32 1.442695, %v267_v25  ;;  %v304_v32 = vcombine.high %v267_v25, %v267_v25  ;;  %v306_v34 = vsel %vm301_vm2, %v267_v25, 0.0  ;;  %v332_v9 = vunpack.c.0.s8 %v331_v1 }
  0x50   : > { %v308_v39 = vsel %vm248_vm0, %v306_v34, 0.0  ;;  %v378_v25 = vsel %vm366_vm4, %v377_v23, 0.0 }
  0x51   : > { %616 = vpow2.f32 %v268_v26  ;;  %v307_v37 = vsel %vm302_vm3, %v304_v32, 0.0  ;;  %v309_v44 = vrot.slane %v308_v39, 4  ;;  %v335_v13 = vsub.s32 %v332_v9, %v917_v27 }
  0x52   : > { %v315_v43 = vsel %vm248_vm0, %v307_v37, 0.0 }
  0x53   : > { %v316_v47 = vrot.slane %v315_v43, 4  ;;  %v310_v50 = vadd.f32 %v309_v44, %v308_v39 }
  0x55   : > { %v317_v53 = vadd.f32 %v316_v47, %v315_v43  ;;  %v311_v56 = vrot.slane %v310_v50, 2 }
  0x57   : > { %v318_v58 = vrot.slane %v317_v53, 2  ;;  %v312_v59 = vadd.f32 %v311_v56, %v310_v50 }
  0x59   : > { %v319_v60 = vadd.f32 %v318_v58, %v317_v53  ;;  %v313_v61 = vrot.slane %v312_v59, 1 }
  0x5b   : > { %v320_v62 = vrot.slane %v319_v60, 1  ;;  %v314_v63 = vadd.f32 %v313_v61, %v312_v59 }
  0x5d   : > { %v321_v5 = vadd.f32 %v320_v62, %v319_v60 }
  0x5e   : > { %v617_v33 = vpop.eup %616 }
  0x5f   : > { %v271_v35 = vcombine.high %v617_v33, %v617_v33  ;;  %v273_v36 = vsel %vm248_vm0, %v617_v33, 0.0 }
  0x60   : > { %v274_v38 = vrot.slane %v273_v36, 4 }
  0x61   : > { %v280_v40 = vsel %vm248_vm0, %v271_v35, 0.0 }
  0x62   : > { %v275_v41 = vadd.f32 %v274_v38, %v273_v36  ;;  %v281_v42 = vrot.slane %v280_v40, 4 }
  0x64   : > { %v276_v45 = vrot.slane %v275_v41, 2  ;;  %v282_v46 = vadd.f32 %v281_v42, %v280_v40 }
  0x66   : > { %v277_v48 = vadd.f32 %v276_v45, %v275_v41  ;;  %v283_v49 = vrot.slane %v282_v46, 2 }
  0x68   : > { %v278_v51 = vrot.slane %v277_v48, 1  ;;  %v284_v52 = vadd.f32 %v283_v49, %v282_v46 }
  0x6a   : > { %v279_v54 = vadd.f32 %v278_v51, %v277_v48  ;;  %v285_v55 = vrot.slane %v284_v52, 1 }
  0x6c   : > { %v286_v57 = vadd.f32 %v285_v55, %v284_v52  ;;  %618 = vlog2.f32 %v279_v54 }
  0x6e   : > { %620 = vlog2.f32 %v286_v57 }
  0x79   : > { %v619_v3 = vpop.eup %618 }
  0x7a   : > { %v288_v4 = vmul.f32 0.6931472, %v619_v3 }
  0x7b   : > { %v621_v6 = vpop.eup %620 }
  0x7c   : > { %v290_v7 = vmul.f32 0.6931472, %v621_v6  ;;  %v322_v8 = vsub.f32 %v314_v63, %v288_v4 }
  0x7e   : > { %v323_v10 = vsub.f32 %v321_v5, %v290_v7  ;;  %v325_v11 = vsub.f32 0.0, %v322_v8 }
  0x80   : > { %v326_v12 = vsub.f32 0.0, %v323_v10 }
  0x82   : > { %v329_v14 = vcombine.low %v325_v11, %v326_v12 }
  0x84   : > { %v336_v15 = vrot.slane %v329_v14, %v335_v13 }
  0x86   : > { %v343_v16 = vrot.slane %v336_v15, %v335_v13 }
  0x88   : > { %v345_v17 = vsel %vm324_vm1, %v343_v16, 0.0 }
  0x89   : > { %v349_v18 = vrot.slane %v345_v17, 1 }
  0x8b   : > { %v351_v20 = vadd.f32 %v349_v18, %v345_v17 }
  0x8d   : > { %v357_v21 = vadd.f32 %v356_v19, %v351_v20 }
  0x8f   : > { %358 = vst [vmem:[#allocation2] sm:$0x1] %v357_v21 }
  0x96   : > { %v365_v22 = vld [vmem:[#allocation2] sm:$0x1] }
  0x97   : > { %v367_v24 = vsel %vm366_vm4, %v365_v22, 0.0 }
  0x98   : > { %368 = vadd.xlane.f32.xlu0 %v367_v24 }
  0x9c   : > { %379 = vadd.xlane.f32.xlu0 %v378_v25 }
 0x121   : > { %v369_v26 = vpop.xlane.xlu0 %368 }
 0x122   : > { %v370_v28 = vrot.slane %v369_v26, 4 }
 0x124   : > { %v371_v29 = vadd.f32 %v370_v28, %v369_v26 }
 0x125   : > { %v380_v30 = vpop.xlane.xlu0 %379 }
 0x126   : > { %v372_v2 = vrot.slane %v371_v29, 2  ;;  %v381_v31 = vrot.slane %v380_v30, 4 }
 0x128   : > { %v382_v32 = vadd.f32 %v381_v31, %v380_v30  ;;  %v373_v33 = vadd.f32 %v372_v2, %v371_v29 }
 0x12a   : > { %v383_v34 = vrot.slane %v382_v32, 2  ;;  %v374_v35 = vrot.slane %v373_v33, 1 }
 0x12c   : > { %v384_v36 = vadd.f32 %v383_v34, %v382_v32  ;;  %v375_v37 = vadd.f32 %v374_v35, %v373_v33 }
 0x12e   : > { %542 = vpush %v375_v37  ;;  %v385_v38 = vrot.slane %v384_v36, 1 }
 0x130   : > { %v386_v39 = vadd.f32 %v385_v38, %v384_v36 }
 0x132   : > { %544 = vpush %v386_v39 }
 0x15f   : > { %s543_s26 = spop %542 }
 0x160   : > { %v389_v40 = vstv %s543_s26 }
 0x163   : > { %s545_s29 = spop %544 }
 0x164   : > { %v390_v41 = vstv %s545_s29 }
 0x165   : > { %v391_v42 = vsel %vm388_vm5, %v389_v40, %v390_v41 }
 0x166   : > { %392 = vst [vmem:[%s232_s27] sm:$0x3] %v391_v42 }
 0x167   : > { %691 = shalt.err (!%p688_p6)
}
 0x168   : > { %s692_s16 = scalar_lea.hbm %s939_s8, 32  ;;  %s696_s5 = scalar_lea.hbm %s983_s2, 64 }
 0x169   : > { %p693_p7 = scmp.ne.s32.totalorder %s939_s8, %s692_s16  ;;  %p697_p4 = scmp.lt.s32.totalorder %s939_s8, %s983_s2 }
 0x16a   : > { %p698_p10 = scmp.lt.s32.totalorder %s696_s5, %s692_s16 }
 0x16b   : > { %p694_p1 = pnand %p693_p7, %p835_p9 }
 0x16c   : > { %p699_p8 = por %p698_p10, %p697_p4 }
 0x16d   : > { %p695_p2 = pneg %p694_p1 }
 0x16f   : > { %p700_p0 = pnand %p699_p8, %p695_p2 }
 0x171   : > { %703 = shalt.err (!%p700_p0)
}
 0x172   : > { %550 = dma.vmem_to_hbm [thread:$0]  (%p835_p9), %s409_s28, 32, %s939_s8, %s394_s30  }
 0x173 PF: > { %s420_s21 = sand.u32 1, %s742_s9   ;;  %p990_p3 = scmp.ge.s32.totalorder %s762_s14, 2 }
 0x174   : > { %s421_s26 = scalar_lea.sflag [#allocation6], %s420_s21 }
 0x175   : > { %p560_p13 = pnand %p990_p3, %p842_p11 }
 0x177   : > { %p561_p5 = pneg %p560_p13 }
 0x179   : > { %737 = dma.done.wait (%p561_p5), %s421_s26, 32  }
 0x17a   : > { %739 = vsyncadd (%p561_p5), %s421_s26, 4294967264  ;;  %s21_s14 = sadd.s32 1, %s762_s14   ;;  %s991_s9 = smov %s746_s10 }
 0x17b   : > { %p18_p12 = scmp.ge.s32.totalorder %s21_s14, 4   ;;  %s992_s10 = smov %s750_s11 }
 0x17c   : > { %s993_s11 = smov %s840_s23  ;;  %s994_s12 = smov %s758_s13 }
 0x17d   : > { %s995_s13 = smov %s997_s17  ;;  %20 = sbr.rel (!%p18_p12) target bundleno = 8 (0x8), region = 94 }
 0x182   :  { %426 = vsyncpa [#allocation5], 1 }
 0x183   :  { %428 = vsyncpa [#allocation5 + $0x1], 1 }
 0x184   :  { %429 = vsyncpa [#allocation8], 1 }
 0x185   :  { %431 = vsyncpa [#allocation8 + $0x1], 1 }
 0x186   :  { %432 = vsyncpa [#allocation6], 1 }
 0x187   :  { %434 = vsyncpa [#allocation6 + $0x1], 1 }

</bundles_post_ra>
